<compile_context>
chip_gen: v7x
topology: tpu7x:2x2x1
jax: 0.10.0
libtpu: 0.0.40
codegen_flags: <defaults>
</compile_context>

<pallas_src>
import functools
import math

import jax
import jax.numpy as jnp
from jax.experimental import pallas as pl
from jax.experimental.pallas import tpu as pltpu

LN_EPS = 1e-6


# --------------------------------------------------------------------------------------
# Stage 1: fused K/V projection (runs once per (batch, kv-tile), not once per query tile).
# --------------------------------------------------------------------------------------
def _kv_proj_kernel(k_ref, v_ref, wk_ref, wv_ref, kp_ref, vp_ref):
    cdt = wk_ref.dtype
    kp_ref[0] = jnp.dot(k_ref[0].astype(cdt), wk_ref[...],
                        preferred_element_type=jnp.float32).astype(kp_ref.dtype)
    vp_ref[0] = jnp.dot(v_ref[0].astype(cdt), wv_ref[...],
                        preferred_element_type=jnp.float32).astype(vp_ref.dtype)


# --------------------------------------------------------------------------------------
# Stage 2: attention + output projection + residual + LayerNorm (query-tiled).
# --------------------------------------------------------------------------------------
def _mha_kernel(q_ref, kp_ref, vp_ref, mask_ref,
                wq_ref, wo_ref, gamma_ref, beta_ref,
                out_ref,
                *, n_head, d_k, exp_bf16):
    q = q_ref[0]              # (tq, d_model)  f32 (kept f32 for the residual)
    kp = kp_ref[0]            # (lk, H*d_k)    compute dtype (pre-projected K)
    vp = vp_ref[0]            # (lk, H*d_k)    compute dtype (pre-projected V)
    mask = mask_ref[0]        # (tq, lk)       bf16, 1.0 == masked

    wq = wq_ref[...]          # (d_model, H*d_k) compute dtype
    wo = wo_ref[...]          # (H*d_k, d_model) compute dtype
    cdt = wq.dtype

    d_model = q.shape[-1]
    inv_temper = 1.0 / math.sqrt(float(d_k))

    # Q projection: one lane-dense MXU matmul, scaled by 1/sqrt(d_k), cast to cdt ONCE.
    q_p = (jnp.dot(q.astype(cdt), wq, preferred_element_type=jnp.float32)
           * inv_temper).astype(cdt)                                # (tq, H*d_k)

    # Additive mask bias: one cast + one multiply (finite => fully-masked rows can't NaN).
    bias = mask.astype(jnp.float32) * jnp.float32(-1e30)            # (tq, lk) f32

    exp_dt = jnp.bfloat16 if exp_bf16 else jnp.float32

    # Per-head scaled-dot-product attention; normalization folded into the context.
    ctx_heads = []
    for h in range(n_head):
        lo = h * d_k
        qh = q_p[:, lo:lo + d_k]                    # (tq, d_k) cdt
        kh = kp[:, lo:lo + d_k]                     # (lk, d_k) cdt
        vh = vp[:, lo:lo + d_k]                     # (lk, d_k) cdt

        scores = jnp.einsum('qd,kd->qk', qh, kh,
                            preferred_element_type=jnp.float32) + bias    # (tq, lk) f32
        m = jnp.max(scores, axis=-1, keepdims=True)
        p = jnp.exp((scores - m).astype(exp_dt))                    # EUP (bf16 on v6e/v7x)
        denom = jnp.sum(p, axis=-1, keepdims=True, dtype=jnp.float32)
        ctx = jnp.dot(p.astype(cdt), vh, preferred_element_type=jnp.float32)  # (tq, d_k)
        ctx_heads.append(ctx * pl.reciprocal(denom, approx=True))   # fold 1/denom here

    # Head-major concat (matches torch.cat(torch.split(...), dim=-1)); no VMEM scratch.
    ctx_cat = jnp.concatenate(ctx_heads, axis=-1)                   # (tq, H*d_k) f32
    proj = jnp.dot(ctx_cat.astype(cdt), wo, preferred_element_type=jnp.float32)

    # Residual + LayerNorm (torch.std: unbiased variance, sigma clamped at eps).
    x = proj + q
    mu = jnp.mean(x, axis=-1, keepdims=True)
    xc = x - mu
    var = jnp.sum(xc * xc, axis=-1, keepdims=True) * (1.0 / (d_model - 1))
    inv_sigma = jnp.minimum(jax.lax.rsqrt(var), jnp.float32(1.0 / LN_EPS))
    out_ref[0] = (xc * inv_sigma) * gamma_ref[...] + beta_ref[...]


# --------------------------------------------------------------------------------------
# Wrapper
# --------------------------------------------------------------------------------------
def _vmem_capacity_bytes():
    try:
        cap = getattr(pltpu.get_tpu_info(), "vmem_capacity_bytes", None)
        if cap:
            return int(cap)
    except Exception:
        pass
    return 128 * 2**20


def _invariant_spec(shape):
    """Grid-invariant block, single-buffered when the runtime supports pipeline_mode."""
    index_map = lambda b, t: (0,) * len(shape)
    try:
        return pl.BlockSpec(shape, index_map, pipeline_mode=pl.Buffered(1))
    except Exception:                       # older runtimes: fall back to default buffering
        return pl.BlockSpec(shape, index_map)


def multi_head_att(q, k, v, attn_mask, w_qs, w_ks, w_vs, w_o, gamma, beta,
                   *, compute_dtype=jnp.float32, kv_dtype=None, q_tile=None):
    """q,k,v: [bsz, len, d_model] f32; attn_mask: [bsz, len_q, len_k] ({0,1}, 1 = masked).

    w_qs/w_ks/w_vs: [n_head, d_model, d_k]; w_o: PyTorch Linear weight [d_model, d_model];
    gamma/beta: [d_model].  compute_dtype: MXU operand dtype (f32 or bf16); accumulation is
    always f32.  kv_dtype: storage dtype of the pre-projected K/V (defaults to compute_dtype).
    """
    bsz, len_q, d_model = q.shape
    len_k = k.shape[1]
    n_head, _, d_k = w_qs.shape
    hd = n_head * d_k
    assert hd == d_model, "module requires d_model == n_head * d_k"

    compute_dtype = jnp.dtype(compute_dtype)
    kv_dtype = jnp.dtype(kv_dtype) if kv_dtype is not None else compute_dtype
    wb, kvb = compute_dtype.itemsize, kv_dtype.itemsize

    # Fused projection weights, head-concatenated along the output (lane) dim:
    # column h*d_k + j of wq_cat == w_qs[h, :, j].
    wq_cat = jnp.transpose(w_qs, (1, 0, 2)).reshape(d_model, hd).astype(compute_dtype)
    wk_cat = jnp.transpose(w_ks, (1, 0, 2)).reshape(d_model, hd).astype(compute_dtype)
    wv_cat = jnp.transpose(w_vs, (1, 0, 2)).reshape(d_model, hd).astype(compute_dtype)
    wo_t = jnp.transpose(w_o).astype(compute_dtype)          # (H*d_v, d_model)
    gamma_r = gamma.reshape(1, d_model).astype(jnp.float32)
    beta_r = beta.reshape(1, d_model).astype(jnp.float32)
    mask_bf16 = attn_mask.astype(jnp.bfloat16)
    q_f32 = q.astype(jnp.float32)

    vmem_cap = _vmem_capacity_bytes()
    vmem_target = int(0.85 * vmem_cap)      # ~108 MiB on v5e/v6e, ~54 MiB on v7x

    # ---------------- Stage 1: K/V projection (once per batch element). ----------------
    kv_tile = len_k
    if len_k % 8 == 0:
        for t in (512, 256, 128, 64, 32, 16, 8):
            if len_k % t == 0:
                kv_tile = t
                break
    proj_grid = (bsz, max(1, len_k // kv_tile))

    proj_est = (2 * 2 * 4 * kv_tile * d_model        # k, v f32 blocks (double-buffered)
                + wb * 2 * d_model * hd              # wk, wv (single-buffered)
                + 2 * 2 * kvb * kv_tile * hd         # kp, vp out blocks (double-buffered)
                + 2 * 4 * kv_tile * hd)              # f32 accumulators
    proj_vmem = int(min(vmem_target, max(32 * 2**20, 2 * proj_est)))

    kp, vp = pl.pallas_call(
        _kv_proj_kernel,
        out_shape=(jax.ShapeDtypeStruct((bsz, len_k, hd), kv_dtype),
                   jax.ShapeDtypeStruct((bsz, len_k, hd), kv_dtype)),
        grid_spec=pltpu.PrefetchScalarGridSpec(
            num_scalar_prefetch=0,
            grid=proj_grid,
            in_specs=[
                pl.BlockSpec((1, kv_tile, d_model), lambda b, t: (b, t, 0)),   # k
                pl.BlockSpec((1, kv_tile, d_model), lambda b, t: (b, t, 0)),   # v
                _invariant_spec((d_model, hd)),                                # wk_cat
                _invariant_spec((d_model, hd)),                                # wv_cat
            ],
            out_specs=(pl.BlockSpec((1, kv_tile, hd), lambda b, t: (b, t, 0)),
                       pl.BlockSpec((1, kv_tile, hd), lambda b, t: (b, t, 0))),
        ),
        compiler_params=pltpu.CompilerParams(
            dimension_semantics=("parallel", "parallel"),
            vmem_limit_bytes=proj_vmem),
    )(k.astype(jnp.float32), v.astype(jnp.float32), wk_cat, wv_cat)

    # ---------------- Stage 2: attention + W_o + residual + LayerNorm. ----------------
    def _attn_vmem_est(tq):
        return (2 * 4 * tq * d_model                    # q block (f32, 2-buf)
                + 2 * 2 * kvb * len_k * hd              # kp, vp blocks (2-buf each)
                + 2 * 2 * tq * len_k                    # mask (bf16, 2-buf)
                + 2 * 4 * tq * d_model                  # out block (f32, 2-buf)
                + wb * (d_model * hd + hd * d_model)    # wq, wo (single-buffered)
                + 2 * 4 * d_model                       # gamma, beta
                + (4 + wb) * tq * hd                    # q_p (f32 acc + cdt copy)
                + 3 * 4 * tq * len_k                    # bias + scores + p (per head, f32)
                + 3 * 4 * tq * hd)                      # ctx concat / proj / x temporaries

    if q_tile is None:
        budget = int(0.6 * vmem_cap)                    # headroom for compiler scratch
        fitting = [t for t in (512, 256, 128, 64, 32, 16, 8)
                   if _attn_vmem_est(t) <= budget] or [8]
        divisors = [t for t in fitting if t <= len_q and len_q % t == 0]
        if divisors:
            q_tile = divisors[0]                        # largest exact divisor (no padding)
        else:
            q_tile = min(fitting[0], pl.next_power_of_2(max(len_q, 8)))

    n_q_tiles = pl.cdiv(len_q, q_tile)
    len_q_pad = n_q_tiles * q_tile
    if len_q_pad != len_q:                              # pad (and slice back) instead of a
        pad = len_q_pad - len_q                         # silent full-length fallback block
        q_f32 = jnp.pad(q_f32, ((0, 0), (0, pad), (0, 0)))
        mask_bf16 = jnp.pad(mask_bf16, ((0, 0), (0, pad), (0, 0)), constant_values=1.0)

    attn_est = _attn_vmem_est(q_tile)
    attn_vmem = int(min(vmem_target, max(32 * 2**20, 2 * attn_est)))

    qblk = lambda shape: pl.BlockSpec(shape, lambda b, t: (b, t, 0))   # varies per q-tile
    kvblk = lambda shape: pl.BlockSpec(shape, lambda b, t: (b, 0, 0))  # constant per batch

    grid_spec = pltpu.PrefetchScalarGridSpec(
        num_scalar_prefetch=0,
        grid=(bsz, n_q_tiles),
        in_specs=[
            qblk((1, q_tile, d_model)),           # q (f32, needed for the residual)
            kvblk((1, len_k, hd)),                # K_p (compute dtype)
            kvblk((1, len_k, hd)),                # V_p (compute dtype)
            qblk((1, q_tile, len_k)),             # mask (bf16)
            _invariant_spec((d_model, hd)),       # wq_cat
            _invariant_spec((hd, d_model)),       # wo_t
            _invariant_spec((1, d_model)),        # gamma
            _invariant_spec((1, d_model)),        # beta
        ],
        out_specs=pl.BlockSpec((1, q_tile, d_model), lambda b, t: (b, t, 0)),
    )

    kernel = functools.partial(_mha_kernel, n_head=n_head, d_k=d_k,
                               exp_bf16=(compute_dtype == jnp.dtype(jnp.bfloat16)))
    out = pl.pallas_call(
        kernel,
        out_shape=jax.ShapeDtypeStruct((bsz, len_q_pad, d_model), jnp.float32),
        grid_spec=grid_spec,
        compiler_params=pltpu.CompilerParams(
            dimension_semantics=("parallel", "parallel"),   # both TCs on v7x
            vmem_limit_bytes=attn_vmem),
    )(q_f32, kp, vp, mask_bf16, wq_cat, wo_t, gamma_r, beta_r)

    if len_q_pad != len_q:
        out = out[:, :len_q]
    return out


def multi_head_att_ref(q, k, v, attn_mask, w_qs, w_ks, w_vs, w_o, gamma, beta):
    """Pure-JAX reference mirroring the PyTorch forward (dropout = 0)."""
    n_head, d_model, d_k = w_qs.shape
    qh = jnp.einsum('bld,hdk->hblk', q, w_qs)
    kh = jnp.einsum('bld,hdk->hblk', k, w_ks)
    vh = jnp.einsum('bld,hdk->hblk', v, w_vs)
    scores = jnp.einsum('hbqd,hbkd->hbqk', qh, kh) / math.sqrt(d_k)
    scores = jnp.where(attn_mask[None] > 0.5, -jnp.inf, scores)
    attn = jax.nn.softmax(scores, axis=-1)
    out = jnp.einsum('hbqk,hbkd->hbqd', attn, vh)
    out = jnp.transpose(out, (1, 2, 0, 3)).reshape(q.shape[0], q.shape[1], n_head * d_k)
    out = out @ w_o.T
    x = out + q
    mu = jnp.mean(x, axis=-1, keepdims=True)
    var = jnp.sum((x - mu) ** 2, axis=-1, keepdims=True) / (d_model - 1)
    sigma = jnp.maximum(jnp.sqrt(var), LN_EPS)
    return (x - mu) / sigma * gamma + beta


if __name__ == "__main__":
    bsz, seq, d_model, n_head = 2, 8, 32, 4
    d_k = d_model // n_head

    key = jax.random.PRNGKey(0)
    kq, kk, kv, kwq, kwk, kwv, kwo = jax.random.split(key, 7)

    q = jax.random.normal(kq, (bsz, seq, d_model), jnp.float32)
    k = jax.random.normal(kk, (bsz, seq, d_model), jnp.float32)
    v = jax.random.normal(kv, (bsz, seq, d_model), jnp.float32)

    # Causal-style mask (1 = masked); never fully masks a row.
    idx = jnp.arange(seq)
    attn_mask = (idx[None, :] > idx[:, None]).astype(jnp.float32)
    attn_mask = jnp.broadcast_to(attn_mask[None], (bsz, seq, seq))

    # Deterministic params; scaled ~1/sqrt(d_model) so softmax/LN are well-conditioned
    # for the numeric comparison. LayerNorm gamma=1, beta=0.
    scale = 1.0 / math.sqrt(d_model)
    w_qs = jax.random.normal(kwq, (n_head, d_model, d_k), jnp.float32) * scale
    w_ks = jax.random.normal(kwk, (n_head, d_model, d_k), jnp.float32) * scale
    w_vs = jax.random.normal(kwv, (n_head, d_model, d_k), jnp.float32) * scale
    w_o = jax.random.normal(kwo, (d_model, d_model), jnp.float32) * scale
    gamma = jnp.ones((d_model,), jnp.float32)
    beta = jnp.zeros((d_model,), jnp.float32)

    ref = multi_head_att_ref(q, k, v, attn_mask, w_qs, w_ks, w_vs, w_o, gamma, beta)

    # f32 MXU path (tight check).
    out = multi_head_att(q, k, v, attn_mask, w_qs, w_ks, w_vs, w_o, gamma, beta,
                         compute_dtype=jnp.float32)
    out = jax.block_until_ready(out)
    assert out.shape == (bsz, seq, d_model)
    err = float(jnp.max(jnp.abs(out - ref)))
    assert jnp.allclose(out, ref, atol=1e-2, rtol=1e-2), err

    # bf16 MXU path (bf16 K_p/V_p, bf16 exp, f32 accumulation) — looser sanity check.
    out_bf16 = multi_head_att(q, k, v, attn_mask, w_qs, w_ks, w_vs, w_o, gamma, beta,
                              compute_dtype=jnp.bfloat16)
    out_bf16 = jax.block_until_ready(out_bf16)
    assert bool(jnp.all(jnp.isfinite(out_bf16)))
    err_bf = float(jnp.max(jnp.abs(out_bf16 - ref)))
    assert jnp.allclose(out_bf16, ref, atol=2e-1, rtol=2e-1), err_bf

    print("KERNEL_OK")
</pallas_src>

<mosaic_0001>
module attributes {stable_mosaic.version = 11 : i64} {
  func.func @_kv_proj_kernel(%arg0: i32, %arg1: i32, %arg2: memref<1x8x32xf32, #tpu.memory_space<vmem>>, %arg3: memref<1x8x32xf32, #tpu.memory_space<vmem>>, %arg4: memref<32x32xf32, #tpu.memory_space<vmem>>, %arg5: memref<32x32xf32, #tpu.memory_space<vmem>>, %arg6: memref<1x8x32xf32, #tpu.memory_space<vmem>>, %arg7: memref<1x8x32xf32, #tpu.memory_space<vmem>>) attributes {dimension_semantics = [#tpu.dimension_semantics<parallel>, #tpu.dimension_semantics<parallel>], iteration_bounds = array<i64: 2, 1>, scalar_prefetch = 0 : i64, scratch_operands = 0 : i64, tpu.core_type = #tpu.core_type<tc>, window_params = [{transform_indices = @transform_0, window_bounds = array<i64: 1, 8, 32>}, {transform_indices = @transform_1, window_bounds = array<i64: 1, 8, 32>}, {pipeline_mode = #tpu.pipeline_mode<synchronous>, transform_indices = @transform_2, window_bounds = array<i64: 32, 32>}, {pipeline_mode = #tpu.pipeline_mode<synchronous>, transform_indices = @transform_3, window_bounds = array<i64: 32, 32>}, {transform_indices = @transform_4, window_bounds = array<i64: 1, 8, 32>}, {transform_indices = @transform_5, window_bounds = array<i64: 1, 8, 32>}]} {
    %c0 = arith.constant 0 : index
    %c0_0 = arith.constant 0 : index
    %c0_1 = arith.constant 0 : index
    %0 = vector.load %arg2[%c0, %c0_0, %c0_1] : memref<1x8x32xf32, #tpu.memory_space<vmem>>, vector<1x8x32xf32>
    %1 = vector.shape_cast %0 : vector<1x8x32xf32> to vector<8x32xf32>
    %c0_2 = arith.constant 0 : index
    %c0_3 = arith.constant 0 : index
    %2 = vector.load %arg4[%c0_2, %c0_3] : memref<32x32xf32, #tpu.memory_space<vmem>>, vector<32x32xf32>
    %cst = arith.constant dense<0.000000e+00> : vector<8x32xf32>
    %3 = tpu.matmul %1, %2, %cst {dimension_numbers = #tpu.dot_dimension_numbers<[1], [0], [0], [1], [0, 0, 1, 1], [], []>} : vector<8x32xf32>, vector<32x32xf32>, vector<8x32xf32> -> vector<8x32xf32>
    %c0_4 = arith.constant 0 : index
    %c0_5 = arith.constant 0 : index
    %c0_6 = arith.constant 0 : index
    %4 = vector.load %arg6[%c0_4, %c0_5, %c0_6] : memref<1x8x32xf32, #tpu.memory_space<vmem>>, vector<1x8x32xf32>
    %5 = vector.shape_cast %4 : vector<1x8x32xf32> to vector<8x32xf32>
    %6 = vector.shape_cast %3 : vector<8x32xf32> to vector<1x8x32xf32>
    tpu.vector_store %arg6[%c0_4, %c0_5, %c0_6], %6 {strides = array<i32>} : memref<1x8x32xf32, #tpu.memory_space<vmem>>, vector<1x8x32xf32>,
    %c0_7 = arith.constant 0 : index
    %c0_8 = arith.constant 0 : index
    %c0_9 = arith.constant 0 : index
    %7 = vector.load %arg3[%c0_7, %c0_8, %c0_9] : memref<1x8x32xf32, #tpu.memory_space<vmem>>, vector<1x8x32xf32>
    %8 = vector.shape_cast %7 : vector<1x8x32xf32> to vector<8x32xf32>
    %c0_10 = arith.constant 0 : index
    %c0_11 = arith.constant 0 : index
    %9 = vector.load %arg5[%c0_10, %c0_11] : memref<32x32xf32, #tpu.memory_space<vmem>>, vector<32x32xf32>
    %cst_12 = arith.constant dense<0.000000e+00> : vector<8x32xf32>
    %10 = tpu.matmul %8, %9, %cst_12 {dimension_numbers = #tpu.dot_dimension_numbers<[1], [0], [0], [1], [0, 0, 1, 1], [], []>} : vector<8x32xf32>, vector<32x32xf32>, vector<8x32xf32> -> vector<8x32xf32>
    %c0_13 = arith.constant 0 : index
    %c0_14 = arith.constant 0 : index
    %c0_15 = arith.constant 0 : index
    %11 = vector.load %arg7[%c0_13, %c0_14, %c0_15] : memref<1x8x32xf32, #tpu.memory_space<vmem>>, vector<1x8x32xf32>
    %12 = vector.shape_cast %11 : vector<1x8x32xf32> to vector<8x32xf32>
    %13 = vector.shape_cast %10 : vector<8x32xf32> to vector<1x8x32xf32>
    tpu.vector_store %arg7[%c0_13, %c0_14, %c0_15], %13 {strides = array<i32>} : memref<1x8x32xf32, #tpu.memory_space<vmem>>, vector<1x8x32xf32>,
    return
  }
  func.func @transform_0(%arg0: i32, %arg1: i32) -> (i32, i32, i32) {
    %c0_i32 = arith.constant 0 : i32
    %c0_i32_0 = arith.constant 0 : i32
    return %arg0, %arg1, %c0_i32 : i32, i32, i32
  }
  func.func @transform_1(%arg0: i32, %arg1: i32) -> (i32, i32, i32) {
    %c0_i32 = arith.constant 0 : i32
    %c0_i32_0 = arith.constant 0 : i32
    return %arg0, %arg1, %c0_i32 : i32, i32, i32
  }
  func.func @transform_2(%arg0: i32, %arg1: i32) -> (i32, i32) {
    %c0_i32 = arith.constant 0 : i32
    %c0_i32_0 = arith.constant 0 : i32
    %c0_i32_1 = arith.constant 0 : i32
    return %c0_i32, %c0_i32_0 : i32, i32
  }
  func.func @transform_3(%arg0: i32, %arg1: i32) -> (i32, i32) {
    %c0_i32 = arith.constant 0 : i32
    %c0_i32_0 = arith.constant 0 : i32
    %c0_i32_1 = arith.constant 0 : i32
    return %c0_i32, %c0_i32_0 : i32, i32
  }
  func.func @transform_4(%arg0: i32, %arg1: i32) -> (i32, i32, i32) {
    %c0_i32 = arith.constant 0 : i32
    %c0_i32_0 = arith.constant 0 : i32
    return %arg0, %arg1, %c0_i32 : i32, i32, i32
  }
  func.func @transform_5(%arg0: i32, %arg1: i32) -> (i32, i32, i32) {
    %c0_i32 = arith.constant 0 : i32
    %c0_i32_0 = arith.constant 0 : i32
    return %arg0, %arg1, %c0_i32 : i32, i32, i32
  }
}

</mosaic_0001>

<bundles_post_ra>
// kernel: tpu_custom_call.1
= control target key start
LH: loop header
LB: loop body
LE: loop exit
PB: predicated region body
PF: predicated region fallthrough
CT: control target
= control target key end

     0   :  { %s1467_s0 = inlined_call_operand.hbm [shape: f32[2,8,32], index: 0, kind: input, shape index: {}]   ;;  %s1468_s1 = inlined_call_operand.hbm [shape: f32[2,8,32], index: 1, kind: input, shape index: {}]   ;;  %s1469_s2 = inlined_call_operand.hbm [shape: f32[32,32], index: 2, kind: input, shape index: {}]   ;;  %s1470_s3 = inlined_call_operand.hbm [shape: f32[32,32], index: 3, kind: input, shape index: {}]   ;;  %s1471_s4 = inlined_call_operand.hbm [shape: f32[2,8,32], index: 4, kind: output, shape index: {0}]   ;;  %s1472_s5 = inlined_call_operand.hbm [shape: f32[2,8,32], index: 5, kind: output, shape index: {1}]  }
   0x1   :  { %1479 = sst [smem:[#allocation21_spill]] %s1469_s2 }
   0x2   :  { %1480 = sst [smem:[#allocation22_spill]] %s1470_s3 }
   0x3   :  { %11 = vsyncpa [#allocation3], 0 }
   0x4   :  { %13 = vsyncpa [#allocation3 + $0x1], 0 }
   0x5   :  { %14 = vsyncpa [#allocation6], 0 }
   0x6   :  { %16 = vsyncpa [#allocation6 + $0x1], 0 }
   0x7   :  { %17 = vsyncpa [#allocation9], 0 }
   0x8   :  { %18 = vsyncpa [#allocation4], 0 }
   0x9   :  { %20 = vsyncpa [#allocation4 + $0x1], 0 }
   0xa   :  { %21 = vsyncpa [#allocation12], 0 }
   0xb   :  { %23 = vsyncpa [#allocation12 + $0x1], 0  ;;  %s1140_s18 = smov 0   ;;  %s1142_s19 = smov 0  }
   0xc   :  { %s1144_s20 = smov 0   ;;  %s1146_s21 = smov 0  }
   0xd   :  { %s1148_s22 = smov 0   ;;  %s1150_s23 = smov 0  }
   0xe LB: > { %1481 = sst [smem:[#allocation19_spill]] %s1093_s22  ;;  %s1171_s24 = sadd.s32 4294967295, %s1097_s23   ;;  %s1097_s23 = sphi %s1150_s23, %s29_s23   ;;  %s1093_s22 = sphi %s1148_s22, %s1502_s22   ;;  %s1089_s21 = sphi %s1146_s21, %s1501_s21   ;;  %s1085_s20 = sphi %s1144_s20, %s1505_s20   ;;  %s1081_s19 = sphi %s1142_s19, %s1504_s19   ;;  %s1077_s18 = sphi %s1140_s18, %s1503_s18  }
   0xf   : > { %s689_s25 = sadd.s32 4294967294, %s1097_s23   ;;  %p63_p0 = scmp.ne.s32.totalorder %s1081_s19, %s1077_s18 }
  0x10   : > { %p1473_p1 = scmp.eq.s32.totalorder %s1171_s24, 0  ;;  %p165_p3 = scmp.eq.s32.totalorder %s689_s25, 1 }
  0x11   : > { %p690_p5 = scmp.ge.s32.totalorder %s1097_s23, 1  ;;  %p200_p7 = scmp.lt.s32.totalorder %s1097_s23, 3 }
  0x12   : > { %p1180_p4 = por %p1473_p1, %p63_p0  ;;  %p1185_p6 = por %p165_p3, %p63_p0 }
  0x13   : > { %p1190_p8 = pnand %p690_p5, %p200_p7  ;;  %s1099_s29 = smov [#allocation7]  }
  0x14   : > { %s1482_s26 = scalar_select %p1180_p4, 1, 0 }
  0x15   : > { %s1483_s27 = scalar_select %p1185_p6, 1, 0 }
  0x16   : > { %s1484_s28 = scalar_select %p1190_p8, 1, 0 }
  0x17   : > { %s212_s30 = sshll.u32 %s1099_s29, 4  ;;  %p773_p9 = pneg %p1190_p8  ;;  %s1194_s30 = int_to_ptr.vmem [resolvable:$true] %s212_s30 }
  0x18   : > { %s1100_s7 = smov [#allocation8]   ;;  %s1486_s2 = sld [smem:[#allocation21_spill]] }
  0x19   : > { %p1201_p11 = pnand %p773_p9, %p1473_p1  ;;  %s225_s8 = sshll.u32 %s1100_s7, 4  ;;  %s1205_s8 = int_to_ptr.vmem [resolvable:$true] %s225_s8 }
  0x1b   : > { %p857_p13 = pneg %p1201_p11 }
  0x1e   : > { %s855_s11 = scalar_lea.hbm %s1486_s2, 512 }
  0x1f   : > { %p856_p12 = scmp.ne.s32.totalorder %s1486_s2, %s855_s11  ;;  %p862_p5 = scmp.lt.u32.totalorder %s855_s11, %s1486_s2 }
  0x21   : > { %p858_p0 = pnand %p857_p13, %p856_p12 }
  0x23   : > { %p859_p3 = pneg %p858_p0 }
  0x25   : > { %p864_p7 = pnand %p862_p5, %p859_p3 }
  0x27   : > { %867 = shalt.err (!%p864_p7)
}
  0x28   : > { %s868_s16 = scalar_lea.vmem %s1194_s30, 512  ;;  %p876_p2 = scmp.lt.s32.totalorder %s1194_s30, %s1194_s30 }
  0x29   : > { %p869_p9 = scmp.ne.s32.totalorder %s1194_s30, %s868_s16  ;;  %p877_p12 = scmp.lt.s32.totalorder %s868_s16, %s868_s16 }
  0x2b   : > { %p871_p10 = pnand %p869_p9, %p857_p13  ;;  %p878_p0 = por %p877_p12, %p876_p2 }
  0x2d   : > { %p872_p1 = pneg %p871_p10 }
  0x2f   : > { %p879_p6 = pnand %p878_p0, %p872_p1 }
  0x31   : > { %882 = shalt.err (!%p879_p6)
}
  0x32   : > { %s1101_s17 = smov 128   ;;  %s1102_s25 = smov 8  }
  0x33   : > { %776 = dma.hbm_to_vmem [thread:$0]  (!%p1201_p11), %s1486_s2, 512, %s1194_s30, [#allocation6], %s1101_s17, %s1101_s17, %s1102_s25  }
  0x34   : > { %s1487_s3 = sld [smem:[#allocation22_spill]] }
  0x3a   : > { %s883_s11 = scalar_lea.hbm %s1487_s3, 512 }
  0x3b   : > { %p884_p2 = scmp.ne.s32.totalorder %s1487_s3, %s883_s11  ;;  %p890_p10 = scmp.lt.u32.totalorder %s883_s11, %s1487_s3 }
  0x3d   : > { %p886_p1 = pnand %p884_p2, %p857_p13 }
  0x3f   : > { %p887_p6 = pneg %p886_p1 }
  0x41   : > { %p892_p3 = pnand %p890_p10, %p887_p6 }
  0x43   : > { %895 = shalt.err (!%p892_p3)
}
  0x44   : > { %s896_s30 = scalar_lea.vmem %s1205_s8, 512  ;;  %p904_p12 = scmp.lt.s32.totalorder %s1205_s8, %s1205_s8 }
  0x45   : > { %p897_p5 = scmp.ne.s32.totalorder %s1205_s8, %s896_s30  ;;  %p905_p0 = scmp.lt.s32.totalorder %s896_s30, %s896_s30 }
  0x47   : > { %p899_p7 = pnand %p897_p5, %p857_p13  ;;  %p906_p2 = por %p905_p0, %p904_p12 }
  0x49   : > { %p900_p9 = pneg %p899_p7 }
  0x4b   : > { %p907_p1 = pnand %p906_p2, %p900_p9 }
  0x4d   : > { %910 = shalt.err (!%p907_p1)
}
  0x4e   : > { %779 = dma.hbm_to_vmem [thread:$0]  (!%p1201_p11), %s1487_s3, 512, %s1205_s8, [#allocation9], %s1101_s17, %s1101_s17, %s1102_s25  }
  0x4f   : > { %s41_s7 = sadd.s32 1, %s1093_s22  ;;  %s50_s9 = sadd.s32 1, %s1085_s20 }
  0x50   : > { %p43_p13 = scmp.ge.s32.totalorder %s41_s7, 2  ;;  %p57_p6 = scmp.ne.s32.totalorder %s1085_s20, %s1081_s19 }
  0x51   : > { %p58_p10 = scmp.eq.s32.totalorder %s1097_s23, 0  ;;  %p796_p3 = scmp.lt.s32.totalorder %s1097_s23, 2 }
  0x52   : > { %s1507_s7 = smov (%p43_p13, %s41_s7), 0  ;;  %p1489_p7 = scmp.eq.s32.totalorder %s1171_s24, 1 }
  0x53   : > { %1488 = sst [smem:[#allocation20_spill]] %s1507_s7  ;;  %p59_p5 = por %p58_p10, %p57_p6 }
  0x54   : > { %p1269_p9 = por %p1489_p7, %p57_p6  ;;  %s45_s10 = ssub.s32 %s1093_s22, %s1507_s7 }
  0x55   : > { %s239_s11 = sand.u32 1, %s1085_s20   ;;  %p48_p12 = scmp.eq.s32.totalorder %s45_s10, 0 }
  0x56   : > { %s1490_s6 = scalar_select %p1269_p9, 1, 0 }
  0x57   : > { %s1276_s8 = sshll.u32 %s239_s11, 3  ;;  %s695_s17 = sshll.u32 %s1093_s22, 7 }
  0x58   : > { %s1280_s25 = scalar_select %p48_p12, %s1085_s20, %s50_s9  }
  0x59   : > { %s1285_s14 = scalar_lea.hbm %s1467_s0, %s695_s17  ;;  %s243_s15 = scalar_lea.vmem [#allocation2], %s1276_s8 }
  0x5a   : > { %s251_s30 = sshll.u32 %s243_s15, 4  ;;  %p1290_p11 = pnand %p796_p3, %p59_p5  ;;  %s1294_s30 = int_to_ptr.vmem [resolvable:$true] %s251_s30 }
  0x5b   : > { %s1299_s10 = scalar_lea.hbm %s1468_s1, %s695_s17  ;;  %s240_s12 = scalar_lea.sflag [#allocation3], %s239_s11 }
  0x5c   : > { %s911_s13 = scalar_lea.hbm %s1285_s14, 128  ;;  %p913_p2 = pneg %p1290_p11 }
  0x5d   : > { %p912_p0 = scmp.ne.s32.totalorder %s1285_s14, %s911_s13  ;;  %s916_s3 = scalar_lea.hbm %s1467_s0, 256 }
  0x5e   : > { %p917_p6 = scmp.lt.u32.totalorder %s1285_s14, %s1467_s0  ;;  %p918_p10 = scmp.lt.u32.totalorder %s916_s3, %s911_s13 }
  0x5f   : > { %p914_p1 = pnand %p913_p2, %p912_p0  ;;  %p920_p5 = scmp.lt.u32.totalorder %s911_s13, %s1285_s14 }
  0x60   : > { %p919_p3 = por %p918_p10, %p917_p6 }
  0x61   : > { %p915_p13 = pneg %p914_p1 }
  0x62   : > { %p921_p7 = por %p920_p5, %p919_p3 }
  0x64   : > { %p922_p12 = pnand %p921_p7, %p915_p13 }
  0x66   : > { %925 = shalt.err (!%p922_p12)
}
  0x67   : > { %s926_s11 = scalar_lea.vmem %s1294_s30, 128  ;;  %s1103_s2 = smov [#allocation2]  }
  0x68   : > { %p927_p0 = scmp.ne.s32.totalorder %s1294_s30, %s926_s11  ;;  %s931_s17 = sshll.u32 %s1103_s2, 4  ;;  %s932_s17 = int_to_ptr.vmem [resolvable:$false] %s931_s17 }
  0x69   : > { %s933_s22 = scalar_lea.vmem %s932_s17, 256  ;;  %p934_p4 = scmp.lt.s32.totalorder %s1294_s30, %s932_s17 }
  0x6a   : > { %p929_p1 = pnand %p927_p0, %p913_p2  ;;  %p935_p6 = scmp.lt.s32.totalorder %s933_s22, %s926_s11 }
  0x6c   : > { %p930_p9 = pneg %p929_p1  ;;  %p936_p10 = por %p935_p6, %p934_p4 }
  0x6e   : > { %p937_p3 = pnand %p936_p10, %p930_p9 }
  0x70   : > { %940 = shalt.err (!%p937_p3)
}
  0x71   : > { %783 = dma.hbm_to_vmem [thread:$0]  (!%p1290_p11), %s1285_s14, 128, %s1294_s30, %s240_s12  }
  0x72   : > { %s258_s3 = sand.u32 1, %s1097_s23   ;;  %s262_s7 = scalar_lea.vmem [#allocation5], %s1276_s8 }
  0x73   : > { %s270_s29 = sshll.u32 %s262_s7, 4  ;;  %s259_s9 = scalar_lea.sflag [#allocation6], %s258_s3  ;;  %s271_s29 = int_to_ptr.vmem [resolvable:$true] %s270_s29 }
  0x74   : > { %s941_s13 = scalar_lea.hbm %s1299_s10, 128  ;;  %s946_s2 = scalar_lea.hbm %s1468_s1, 256 }
  0x75   : > { %p942_p4 = scmp.ne.s32.totalorder %s1299_s10, %s941_s13  ;;  %p947_p5 = scmp.lt.u32.totalorder %s1299_s10, %s1468_s1 }
  0x76   : > { %p948_p7 = scmp.lt.u32.totalorder %s946_s2, %s941_s13  ;;  %p950_p0 = scmp.lt.u32.totalorder %s941_s13, %s1299_s10 }
  0x77   : > { %p944_p9 = pnand %p942_p4, %p913_p2 }
  0x78   : > { %p949_p12 = por %p948_p7, %p947_p5 }
  0x79   : > { %p945_p13 = pneg %p944_p9 }
  0x7a   : > { %p951_p1 = por %p950_p0, %p949_p12 }
  0x7c   : > { %p952_p6 = pnand %p951_p1, %p945_p13 }
  0x7e   : > { %955 = shalt.err (!%p952_p6)
}
  0x7f   : > { %s956_s8 = scalar_lea.vmem %s271_s29, 128  ;;  %s1104_s14 = smov [#allocation5]  }
  0x80   : > { %p957_p10 = scmp.ne.s32.totalorder %s271_s29, %s956_s8  ;;  %s961_s30 = sshll.u32 %s1104_s14, 4  ;;  %s962_s30 = int_to_ptr.vmem [resolvable:$false] %s961_s30 }
  0x81   : > { %s963_s12 = scalar_lea.vmem %s962_s30, 256  ;;  %p964_p9 = scmp.lt.s32.totalorder %s271_s29, %s962_s30 }
  0x82   : > { %p959_p3 = pnand %p957_p10, %p913_p2  ;;  %p965_p8 = scmp.lt.s32.totalorder %s963_s12, %s956_s8 }
  0x84   : > { %p960_p4 = pneg %p959_p3  ;;  %p966_p5 = por %p965_p8, %p964_p9 }
  0x86   : > { %p967_p7 = pnand %p966_p5, %p960_p4 }
  0x88   : > { %970 = shalt.err (!%p967_p7)
}
  0x89   : > { %786 = dma.hbm_to_vmem [thread:$0]  (!%p1290_p11), %s1299_s10, 128, %s271_s29, %s259_s9  }
  0x8a   : > { %p1492_p13 = scmp.ne.s32.totalorder %s1484_s28, 0 }
  0x8b   : > { %s1350_s3 = sand.u32 (!%p1492_p13), 1, %s1081_s19   ;;  %p1493_p8 = scmp.ne.s32.totalorder (!%p1492_p13), %s1482_s26, 0 }
  0x8c   : > { %279 = sbr.rel (%p1492_p13) target bundleno = 419 (0x1a3), region = 36  ;;  %s1353_s7 = sshll.u32 (!%p1492_p13), %s1350_s3, 3 }
  0x8d   : > { %s282_s13 = scalar_lea.sflag (!%p1492_p13), [#allocation3], %s1350_s3  ;;  %s285_s15 = scalar_lea.vmem (!%p1492_p13), [#allocation2], %s1353_s7 }
  0x93   : > { %1052 = dma.done.wait (%p1493_p8), %s282_s13, 128  }
  0x94   : > { %1054 = vsyncadd (%p1493_p8), %s282_s13, 4294967168  ;;  %s290_s28 = sand.u32 1, %s1171_s24   ;;  %s294_s10 = scalar_lea.vmem [#allocation5], %s1353_s7 }
  0x95   : > { %s291_s16 = scalar_lea.sflag [#allocation6], %s290_s28 }
  0x96   : > { %1056 = dma.done.wait (%p1493_p8), %s291_s16, 128  }
  0x97   : > { %1058 = vsyncadd (%p1493_p8), %s291_s16, 4294967168  ;;  %p1494_p11 = scmp.eq.s32.totalorder %s1171_s24, 0 }
  0x99   : > { %1060 = dma.done.wait (%p1494_p11), [#allocation6], 512   ;;  %p1495_p2 = pmov %p1494_p11 }
  0x9b   : > { %1062 = vsyncadd (%p1495_p2), [#allocation6], 4294966784  ;;  %p1496_p12 = pmov %p1495_p2 }
  0x9c   : > { %p1497_p0 = pmov %p1495_p2 }
  0x9d   : > { %1064 = dma.done.wait (%p1496_p12), [#allocation9], 512  }
  0x9e   : > { %1066 = vsyncadd (%p1497_p0), [#allocation9], 4294966784  ;;  %v1105_v0 = vmov 0.0|0.0   ;;  %vm1106_vm0 = vmmov 0   ;;  %v1107_v1 = vmov 0.0   ;;  %v340_v2 = vld [vmem:[#allocation7] sm:$0xff] }
  0x9f   : > { %745 = vmatprep.subr.bf16.mxu0 %v1105_v0  ;;  %751 = vmatprep.subr.bf16.mxu1 %v1105_v0  ;;  %v341_v3 = vld [vmem:[#allocation7 + $0x8] sm:$0xff]  ;;  %v420_v4 = vld [vmem:[#allocation8] sm:$0xff]  ;;  %v342_v7 = vld [vmem:[#allocation7 + $0x10] sm:$0xff]  ;;  %vm344_vm1 = vcmask 261120   ;;  %s709_s24 = sshll.u32 %s1089_s21, 7  ;;  %s331_s26 = scalar_lea.vmem [#allocation10], %s1353_s7 }
  0xa0   : > { %731 = vmatprep.mubr.msk.f32.mxu0 %vm1106_vm0, %v1107_v1  ;;  %742 = vmatprep.mubr.msk.f32.mxu1 %vm1106_vm0, %v1107_v1  ;;  %v746_v5 = vpack.c.bf16 %v341_v3, %v340_v2  ;;  %v421_v6 = vld [vmem:[#allocation8 + $0x8] sm:$0xff]  ;;  %v343_v8 = vld [vmem:[#allocation7 + $0x18] sm:$0xff]  ;;  %v422_v10 = vld [vmem:[#allocation8 + $0x10] sm:$0xff]  ;;  %s518_s29 = sshll.u32 %s331_s26, 4  ;;  %s338_s9 = scalar_lea.vmem [#allocation11], %s1353_s7  ;;  %s1389_s29 = int_to_ptr.vmem [resolvable:$true] %s518_s29 }
  0xa1   : > { %v752_v9 = vpack.c.bf16 %v421_v6, %v420_v4  ;;  %v423_v11 = vld [vmem:[#allocation8 + $0x18] sm:$0xff]  ;;  %v749_v12 = vpack.c.bf16 %v343_v8, %v342_v7  ;;  %v339_v14 = vld [vmem:[%s285_s15] sm:$0xff]  ;;  %s532_s11 = sshll.u32 %s338_s9, 4  ;;  %s1387_s22 = scalar_lea.hbm %s1471_s4, %s709_s24  ;;  %s1396_s11 = int_to_ptr.vmem [resolvable:$true] %s532_s11 }
  0xa2   : > { %747 = vmatpush3.bf16.msra.mxu0 %v746_v5  ;;  %v755_v13 = vpack.c.bf16 %v423_v11, %v422_v10  ;;  %v419_v15 = vld [vmem:[%s294_s10] sm:$0xff]  ;;  %s1394_s30 = scalar_lea.hbm %s1472_s5, %s709_s24  ;;  %s499_s21 = scalar_lea.sflag [#allocation4], %s1350_s3 }
  0xa3   : > { %753 = vmatpush3.bf16.msra.mxu1 %v752_v9  ;;  %748 = vmatprep.subr.bf16.mxu0 %v1105_v0  ;;  %s971_s12 = scalar_lea.vmem %s1389_s29, 128  ;;  %p1498_p6 = scmp.ne.s32.totalorder %s1490_s6, 0 }
  0xa4   : > { %754 = vmatprep.subr.bf16.mxu1 %v1105_v0  ;;  %p972_p1 = scmp.ne.s32.totalorder %s1389_s29, %s971_s12  ;;  %s1108_s7 = smov [#allocation10]  }
  0xa5   : > { %s975_s13 = sshll.u32 %s1108_s7, 4  ;;  %s976_s13 = int_to_ptr.vmem [resolvable:$false] %s975_s13 }
  0xa6   : > { %750 = vmatpush3.bf16.msra.mxu0 %v749_v12  ;;  %p973_p10 = pnand %p972_p1, %p1498_p6  ;;  %s977_s15 = scalar_lea.vmem %s976_s13, 256 }
  0xa7   : > { %756 = vmatpush3.bf16.msra.mxu1 %v755_v13  ;;  %p978_p4 = scmp.lt.s32.totalorder %s1389_s29, %s976_s13  ;;  %p979_p9 = scmp.lt.s32.totalorder %s977_s15, %s971_s12 }
  0xa8   : > { %p974_p3 = pneg %p973_p10 }
  0xa9   : > { %732 = vmatmul.mubr.msk.f32.vlgmr.msra.gmra.mrb[0].mxu0 %vm344_vm1, %v339_v14  ;;  %p980_p5 = por %p979_p9, %p978_p4 }
  0xaa   : > { %743 = vmatmul.mubr.msk.f32.vlgmr.msra.gmra.mrb[0].mxu1 %vm344_vm1, %v419_v15 }
  0xab   : > { %p981_p7 = pnand %p980_p5, %p974_p3 }
 0x17c   : > { %v414_v16 = vpop.f32.mrb[0].mxu0 }
 0x17d   : > { %418 = vst.msk [vmem:[%s331_s26] sm:$0xff] %vm344_vm1, %v414_v16  ;;  %v493_v17 = vpop.f32.mrb[0].mxu1  ;;  %v733_v18 = vpop.f32.mrb[1].mxu0 }
 0x17e   : > { %497 = vst.msk [vmem:[%s338_s9] sm:$0xff] %vm344_vm1, %v493_v17  ;;  %v744_v19 = vpop.f32.mrb[1].mxu1 }
 0x17f   : > { %984 = shalt.err (!%p981_p7)
}
 0x180   : > { %s985_s28 = scalar_lea.hbm %s1387_s22, 128  ;;  %s989_s24 = scalar_lea.hbm %s1471_s4, 256 }
 0x181   : > { %p986_p13 = scmp.ne.s32.totalorder %s1387_s22, %s985_s28  ;;  %p990_p2 = scmp.lt.u32.totalorder %s1387_s22, %s1471_s4 }
 0x182   : > { %p991_p12 = scmp.lt.u32.totalorder %s989_s24, %s985_s28  ;;  %p993_p1 = scmp.lt.u32.totalorder %s985_s28, %s1387_s22 }
 0x183   : > { %p987_p8 = pnand %p986_p13, %p1498_p6 }
 0x184   : > { %p992_p0 = por %p991_p12, %p990_p2 }
 0x185   : > { %p988_p11 = pneg %p987_p8 }
 0x186   : > { %p994_p10 = por %p993_p1, %p992_p0 }
 0x188   : > { %p995_p3 = pnand %p994_p10, %p988_p11 }
 0x18a   : > { %998 = shalt.err (!%p995_p3)
}
 0x18b   : > { %769 = dma.vmem_to_hbm [thread:$0]  (%p1498_p6), %s1389_s29, 128, %s1387_s22, %s499_s21  }
 0x18c   : > { %s504_s2 = scalar_lea.sflag [#allocation12], %s1350_s3  ;;  %s999_s17 = scalar_lea.vmem %s1396_s11, 128 }
 0x18d   : > { %p1000_p4 = scmp.ne.s32.totalorder %s1396_s11, %s999_s17  ;;  %s1109_s8 = smov [#allocation11]  }
 0x18e   : > { %s1003_s14 = sshll.u32 %s1109_s8, 4  ;;  %s1004_s14 = int_to_ptr.vmem [resolvable:$false] %s1003_s14 }
 0x18f   : > { %p1001_p9 = pnand %p1000_p4, %p1498_p6  ;;  %s1005_s12 = scalar_lea.vmem %s1004_s14, 256 }
 0x190   : > { %p1006_p7 = scmp.lt.s32.totalorder %s1396_s11, %s1004_s14  ;;  %p1007_p13 = scmp.lt.s32.totalorder %s1005_s12, %s999_s17 }
 0x191   : > { %p1002_p5 = pneg %p1001_p9 }
 0x192   : > { %p1008_p8 = por %p1007_p13, %p1006_p7 }
 0x194   : > { %p1009_p11 = pnand %p1008_p8, %p1002_p5 }
 0x196   : > { %1012 = shalt.err (!%p1009_p11)
}
 0x197   : > { %s1013_s3 = scalar_lea.hbm %s1394_s30, 128  ;;  %s1017_s21 = scalar_lea.hbm %s1472_s5, 256 }
 0x198   : > { %p1014_p2 = scmp.ne.s32.totalorder %s1394_s30, %s1013_s3  ;;  %p1018_p1 = scmp.lt.u32.totalorder %s1394_s30, %s1472_s5 }
 0x199   : > { %p1019_p10 = scmp.lt.u32.totalorder %s1017_s21, %s1013_s3  ;;  %p1021_p4 = scmp.lt.u32.totalorder %s1013_s3, %s1394_s30 }
 0x19a   : > { %p1015_p12 = pnand %p1014_p2, %p1498_p6 }
 0x19b   : > { %p1020_p3 = por %p1019_p10, %p1018_p1 }
 0x19c   : > { %p1016_p0 = pneg %p1015_p12 }
 0x19d   : > { %p1022_p9 = por %p1021_p4, %p1020_p3 }
 0x19f   : > { %p1023_p5 = pnand %p1022_p9, %p1016_p0 }
 0x1a1   : > { %1026 = shalt.err (!%p1023_p5)
}
 0x1a2   : > { %770 = dma.vmem_to_hbm [thread:$0]  (%p1498_p6), %s1396_s11, 128, %s1394_s30, %s504_s2  }
 0x1a3 PF: > { %s544_s15 = sand.u32 1, %s1077_s18   ;;  %p1499_p7 = scmp.ne.s32.totalorder %s1483_s27, 0 }
 0x1a4   : > { %p1500_p13 = scmp.ge.s32.totalorder %s1097_s23, 2  ;;  %s545_s28 = scalar_lea.sflag [#allocation4], %s544_s15 }
 0x1a6   : > { %p788_p8 = pnand %p1500_p13, %p1499_p7 }
 0x1a8   : > { %1068 = dma.done.wait (!%p788_p8), %s545_s28, 128  }
 0x1a9   : > { %1070 = vsyncadd (!%p788_p8), %s545_s28, 4294967168  ;;  %s554_s16 = scalar_lea.sflag [#allocation12], %s544_s15 }
 0x1aa   : > { %1072 = dma.done.wait (!%p788_p8), %s554_s16, 128  }
 0x1ab   : > { %1074 = vsyncadd (!%p788_p8), %s554_s16, 4294967168  ;;  %s29_s23 = sadd.s32 1, %s1097_s23   ;;  %s1501_s21 = sld [smem:[#allocation19_spill]] }
 0x1ac   : > { %p26_p11 = scmp.ge.s32.totalorder %s29_s23, 4   ;;  %s1502_s22 = sld [smem:[#allocation20_spill]] }
 0x1ad   : > { %s1503_s18 = smov %s1081_s19  ;;  %s1504_s19 = smov %s1085_s20 }
 0x1ae   : > { %s1505_s20 = smov %s1280_s25  ;;  %28 = sbr.rel (!%p26_p11) target bundleno = 14 (0xe), region = 119 }
 0x1b5   :  { %559 = vsyncpa [#allocation3], 1 }
 0x1b6   :  { %561 = vsyncpa [#allocation3 + $0x1], 1 }
 0x1b7   :  { %562 = vsyncpa [#allocation6], 1 }
 0x1b8   :  { %564 = vsyncpa [#allocation6 + $0x1], 1 }
 0x1b9   :  { %565 = vsyncpa [#allocation9], 1 }
 0x1ba   :  { %566 = vsyncpa [#allocation4], 1 }
 0x1bb   :  { %568 = vsyncpa [#allocation4 + $0x1], 1 }
 0x1bc   :  { %569 = vsyncpa [#allocation12], 1 }
 0x1bd   :  { %571 = vsyncpa [#allocation12 + $0x1], 1 }

</bundles_post_ra>
